<compile_context>
chip_gen: v5e
topology: v5e:2x2
jax: 0.10.0
libtpu: 0.0.40
codegen_flags: <defaults>
</compile_context>

<pallas_src>
import functools
import math

import jax
import jax.numpy as jnp
from jax.experimental import pallas as pl
from jax.experimental.pallas import tpu as pltpu


def _sdpa_kernel(q_ref, k_ref, v_ref, mcol_ref, mrow_ref, ctx_ref, attn_ref, *,
                 scale, mxu_dtype):
    # One grid step = one (batch*head, query-tile) pair.
    q = q_ref[...]                                    # (TQ, d_k) f32
    k = k_ref[...]                                    # (L,  d_k) f32
    v = v_ref[...]                                    # (L,  d_k) f32
    mcol = mcol_ref[...]                              # (1, L)   1.0 = valid key
    mrow = mrow_ref[...]                              # (1, TQ)  1.0 = valid query

    # Scale Q (O(TQ*d_k)) instead of the (TQ, L) scores tile, then feed the MXU
    # in bf16 with f32 accumulation.
    qb = (q * jnp.float32(scale)).astype(mxu_dtype)
    kb = k.astype(mxu_dtype)

    # Q @ K^T without an explicit transpose: contract the last dims.
    scores = jax.lax.dot_general(
        qb, kb, (((1,), (1,)), ((), ())),
        preferred_element_type=jnp.float32)           # (TQ, L) f32

    # Single fused select; 1e-9 fill reproduces the PyTorch module (not true -inf masking).
    row_valid = jnp.transpose(mrow) > 0.0             # (TQ, 1)
    col_valid = mcol > 0.0                            # (1, L)
    fill = jnp.float32(1e-9)
    scores = jnp.where(jnp.logical_and(row_valid, col_valid), scores, fill)

    # Softmax over keys, all elementwise math in f32.
    m = jnp.max(scores, axis=-1, keepdims=True)
    e = jnp.exp(scores - m)
    attn = e * pl.reciprocal(jnp.sum(e, axis=-1, keepdims=True), approx=True)

    attn_ref[...] = attn.astype(attn_ref.dtype)

    # attn @ V, again bf16 into the MXU with f32 accumulation.
    ctx = jnp.dot(attn.astype(mxu_dtype), v.astype(mxu_dtype),
                  preferred_element_type=jnp.float32)
    ctx_ref[...] = ctx.astype(ctx_ref.dtype)


def _pick_query_tile(L, target=256):
    """Largest convenient query tile that evenly divides L."""
    if L % target == 0:
        return target
    if L % 128 == 0:
        return 128
    return L  # single full-extent tile (always a legal block shape)


def scaled_dot_product_attention(Q, K, V, attn_mask, *, q_tile=None,
                                 mxu_dtype=jnp.bfloat16):
    """Pallas TPU implementation of ScaledDotProductAttention.forward.

    Q, K, V:   [B, H, L, d_k] float32
    attn_mask: [B, H, L]  (1 = valid, 0 = pad), any numeric/bool dtype
    returns:   (context [B, H, L, d_k], attn [B, H, L, L])
    """
    B, H, L, d_k = Q.shape
    scale = 1.0 / math.sqrt(d_k)
    tq = _pick_query_tile(L) if q_tile is None else q_tile
    assert L % tq == 0, "query tile must divide sequence length"
    n_q = L // tq
    BH = B * H

    Qr = Q.reshape(BH, L, d_k)
    Kr = K.reshape(BH, L, d_k)
    Vr = V.reshape(BH, L, d_k)
    # Single lane-dense mask array (last dim = L); passed twice with different
    # BlockSpecs to provide the column mask (1, L) and the per-tile row mask (1, TQ).
    mask = attn_mask.astype(jnp.float32).reshape(BH, 1, L)

    kernel = functools.partial(_sdpa_kernel, scale=scale, mxu_dtype=mxu_dtype)

    q_spec = pl.BlockSpec((None, tq, d_k), lambda bh, qi: (bh, qi, 0))
    kv_spec = pl.BlockSpec((None, L, d_k), lambda bh, qi: (bh, 0, 0))
    mcol_spec = pl.BlockSpec((None, 1, L), lambda bh, qi: (bh, 0, 0))
    mrow_spec = pl.BlockSpec((None, 1, tq), lambda bh, qi: (bh, 0, qi))
    ctx_spec = pl.BlockSpec((None, tq, d_k), lambda bh, qi: (bh, qi, 0))
    attn_spec = pl.BlockSpec((None, tq, L), lambda bh, qi: (bh, qi, 0))

    # Explicit VMEM budget: double-buffered per-step working set + margin,
    # clamped to the v7x 64 MiB per-core cap (safe on v5e/v6e as well).
    elt = 4
    per_step = (tq * d_k            # Q tile
                + 2 * L * d_k       # K, V (resident per bh)
                + L + tq            # masks
                + tq * L            # attn tile
                + tq * d_k) * elt   # ctx tile
    vmem_limit = int(min(max(2 * per_step + (4 << 20), 32 << 20), 64 << 20))

    ctx, attn = pl.pallas_call(
        kernel,
        out_shape=(
            jax.ShapeDtypeStruct((BH, L, d_k), Q.dtype),
            jax.ShapeDtypeStruct((BH, L, L), jnp.float32),
        ),
        grid_spec=pltpu.PrefetchScalarGridSpec(
            num_scalar_prefetch=0,
            grid=(BH, n_q),
            in_specs=[q_spec, kv_spec, kv_spec, mcol_spec, mrow_spec],
            out_specs=[ctx_spec, attn_spec],
        ),
        compiler_params=pltpu.CompilerParams(
            dimension_semantics=("parallel", "parallel"),
            vmem_limit_bytes=vmem_limit),
    )(Qr, Kr, Vr, mask, mask)

    return ctx.reshape(B, H, L, d_k), attn.reshape(B, H, L, L)


def _reference(Q, K, V, attn_mask, d_k):
    # Pure-JAX f32 reference mirroring the PyTorch forward.
    scores = jnp.einsum("bhqd,bhkd->bhqk", Q, K) / jnp.sqrt(jnp.float32(d_k))
    fill = jnp.float32(1e-9)
    m = attn_mask.astype(bool)
    scores = jnp.where(m[..., :, None], scores, fill)
    scores = jnp.where(m[..., None, :], scores, fill)
    attn = jax.nn.softmax(scores, axis=-1)
    context = jnp.einsum("bhqk,bhkd->bhqd", attn, V)
    return context, attn


if __name__ == "__main__":
    B, H, L, d_k = 2, 2, 8, 32

    key = jax.random.PRNGKey(0)
    kq, kk, kv = jax.random.split(key, 3)
    Q = jax.random.normal(kq, (B, H, L, d_k), dtype=jnp.float32)
    K = jax.random.normal(kk, (B, H, L, d_k), dtype=jnp.float32)
    V = jax.random.normal(kv, (B, H, L, d_k), dtype=jnp.float32)

    # Deterministic padding mask: per-batch valid lengths (shared across heads).
    lengths = jnp.array([L, L - 3], dtype=jnp.int32)                    # [B]
    pos = jnp.arange(L, dtype=jnp.int32)                                # [L]
    attn_mask = (pos[None, :] < lengths[:, None]).astype(jnp.float32)   # [B, L]
    attn_mask = jnp.broadcast_to(attn_mask[:, None, :], (B, H, L))      # [B, H, L]

    context, attn = scaled_dot_product_attention(Q, K, V, attn_mask)
    jax.block_until_ready((context, attn))

    ref_ctx, ref_attn = _reference(Q, K, V, attn_mask, d_k)
    # bf16 MXU inputs + approx reciprocal deviate from the pure-f32 reference by
    # up to ~1e-2; semantics are unchanged (documented per the perf review).
    assert jnp.allclose(context, ref_ctx, rtol=2e-2, atol=2e-2)
    assert jnp.allclose(attn, ref_attn, rtol=2e-2, atol=2e-2)
    assert bool(jnp.all(jnp.isfinite(context))) and bool(jnp.all(jnp.isfinite(attn)))

    print("KERNEL_OK")
</pallas_src>

<mosaic_0001>
module attributes {stable_mosaic.version = 11 : i64} {
  func.func @_sdpa_kernel(%arg0: i32, %arg1: i32, %arg2: memref<1x8x32xf32, #tpu.memory_space<vmem>>, %arg3: memref<1x8x32xf32, #tpu.memory_space<vmem>>, %arg4: memref<1x8x32xf32, #tpu.memory_space<vmem>>, %arg5: memref<1x1x8xf32, #tpu.memory_space<vmem>>, %arg6: memref<1x1x8xf32, #tpu.memory_space<vmem>>, %arg7: memref<1x8x32xf32, #tpu.memory_space<vmem>>, %arg8: memref<1x8x8xf32, #tpu.memory_space<vmem>>) attributes {dimension_semantics = [#tpu.dimension_semantics<parallel>, #tpu.dimension_semantics<parallel>], iteration_bounds = array<i64: 4, 1>, scalar_prefetch = 0 : i64, scratch_operands = 0 : i64, tpu.core_type = #tpu.core_type<tc>, window_params = [{transform_indices = @transform_0, window_bounds = array<i64: 1, 8, 32>}, {transform_indices = @transform_1, window_bounds = array<i64: 1, 8, 32>}, {transform_indices = @transform_2, window_bounds = array<i64: 1, 8, 32>}, {transform_indices = @transform_3, window_bounds = array<i64: 1, 1, 8>}, {transform_indices = @transform_4, window_bounds = array<i64: 1, 1, 8>}, {transform_indices = @transform_5, window_bounds = array<i64: 1, 8, 32>}, {transform_indices = @transform_6, window_bounds = array<i64: 1, 8, 8>}]} {
    %c0 = arith.constant 0 : index
    %c0_0 = arith.constant 0 : index
    %c0_1 = arith.constant 0 : index
    %0 = vector.load %arg2[%c0, %c0_0, %c0_1] : memref<1x8x32xf32, #tpu.memory_space<vmem>>, vector<1x8x32xf32>
    %1 = vector.shape_cast %0 : vector<1x8x32xf32> to vector<8x32xf32>
    %c0_2 = arith.constant 0 : index
    %c0_3 = arith.constant 0 : index
    %c0_4 = arith.constant 0 : index
    %2 = vector.load %arg3[%c0_2, %c0_3, %c0_4] : memref<1x8x32xf32, #tpu.memory_space<vmem>>, vector<1x8x32xf32>
    %3 = vector.shape_cast %2 : vector<1x8x32xf32> to vector<8x32xf32>
    %c0_5 = arith.constant 0 : index
    %c0_6 = arith.constant 0 : index
    %c0_7 = arith.constant 0 : index
    %4 = vector.load %arg4[%c0_5, %c0_6, %c0_7] : memref<1x8x32xf32, #tpu.memory_space<vmem>>, vector<1x8x32xf32>
    %5 = vector.shape_cast %4 : vector<1x8x32xf32> to vector<8x32xf32>
    %c0_8 = arith.constant 0 : index
    %c0_9 = arith.constant 0 : index
    %c0_10 = arith.constant 0 : index
    %6 = vector.load %arg5[%c0_8, %c0_9, %c0_10] : memref<1x1x8xf32, #tpu.memory_space<vmem>>, vector<1x1x8xf32>
    %7 = vector.shape_cast %6 : vector<1x1x8xf32> to vector<1x8xf32>
    %c0_11 = arith.constant 0 : index
    %c0_12 = arith.constant 0 : index
    %c0_13 = arith.constant 0 : index
    %8 = vector.load %arg6[%c0_11, %c0_12, %c0_13] : memref<1x1x8xf32, #tpu.memory_space<vmem>>, vector<1x1x8xf32>
    %9 = vector.shape_cast %8 : vector<1x1x8xf32> to vector<1x8xf32>
    %cst = arith.constant 0.176776692 : f32
    %10 = vector.broadcast %cst : f32 to vector<8x32xf32>
    %11 = arith.mulf %1, %10 : vector<8x32xf32>
    %12 = arith.truncf %11 : vector<8x32xf32> to vector<8x32xbf16>
    %13 = arith.truncf %3 : vector<8x32xf32> to vector<8x32xbf16>
    %cst_14 = arith.constant dense<0.000000e+00> : vector<8x8xf32>
    %14 = tpu.matmul %12, %13, %cst_14 {dimension_numbers = #tpu.dot_dimension_numbers<[1], [1], [0], [0], [0, 0, 1, 0], [], []>} : vector<8x32xbf16>, vector<8x32xbf16>, vector<8x8xf32> -> vector<8x8xf32>
    %15 = tpu.transpose %9, [1, 0] : vector<1x8xf32> -> vector<8x1xf32>
    %cst_15 = arith.constant 0.000000e+00 : f32
    %16 = vector.broadcast %cst_15 : f32 to vector<8x1xf32>
    %17 = arith.cmpf ogt, %15, %16 : vector<8x1xf32>
    %cst_16 = arith.constant 0.000000e+00 : f32
    %18 = vector.broadcast %cst_16 : f32 to vector<1x8xf32>
    %19 = arith.cmpf ogt, %7, %18 : vector<1x8xf32>
    %20 = vector.broadcast %17 : vector<8x1xi1> to vector<8x8xi1>
    %21 = vector.broadcast %19 : vector<1x8xi1> to vector<8x8xi1>
    %22 = arith.andi %20, %21 : vector<8x8xi1>
    %cst_17 = arith.constant 9.99999971E-10 : f32
    %23 = vector.broadcast %cst_17 : f32 to vector<8x8xf32>
    %24 = arith.select %22, %14, %23 : vector<8x8xi1>, vector<8x8xf32>
    %cst_18 = arith.constant dense<0xFF800000> : vector<8xf32>
    %25 = vector.multi_reduction <maximumf>, %24, %cst_18 [1] : vector<8x8xf32> to vector<8xf32>
    %26 = vector.shape_cast %25 : vector<8xf32> to vector<8x1xf32>
    %27 = vector.broadcast %26 : vector<8x1xf32> to vector<8x8xf32>
    %28 = arith.subf %24, %27 : vector<8x8xf32>
    %29 = math.exp %28 : vector<8x8xf32>
    %cst_19 = arith.constant dense<0.000000e+00> : vector<8xf32>
    %30 = vector.multi_reduction <add>, %29, %cst_19 [1] : vector<8x8xf32> to vector<8xf32>
    %31 = vector.shape_cast %30 : vector<8xf32> to vector<8x1xf32>
    %32 = tpu.reciprocal %31 {approx = true} : vector<8x1xf32> -> vector<8x1xf32>
    %33 = vector.broadcast %32 : vector<8x1xf32> to vector<8x8xf32>
    %34 = arith.mulf %29, %33 : vector<8x8xf32>
    %c0_20 = arith.constant 0 : index
    %c0_21 = arith.constant 0 : index
    %c0_22 = arith.constant 0 : index
    %35 = vector.load %arg8[%c0_20, %c0_21, %c0_22] : memref<1x8x8xf32, #tpu.memory_space<vmem>>, vector<1x8x8xf32>
    %36 = vector.shape_cast %35 : vector<1x8x8xf32> to vector<8x8xf32>
    %37 = vector.shape_cast %34 : vector<8x8xf32> to vector<1x8x8xf32>
    tpu.vector_store %arg8[%c0_20, %c0_21, %c0_22], %37 {strides = array<i32>} : memref<1x8x8xf32, #tpu.memory_space<vmem>>, vector<1x8x8xf32>,
    %38 = arith.truncf %34 : vector<8x8xf32> to vector<8x8xbf16>
    %39 = arith.truncf %5 : vector<8x32xf32> to vector<8x32xbf16>
    %cst_23 = arith.constant dense<0.000000e+00> : vector<8x32xf32>
    %40 = tpu.matmul %38, %39, %cst_23 {dimension_numbers = #tpu.dot_dimension_numbers<[1], [0], [0], [1], [0, 0, 1, 1], [], []>} : vector<8x8xbf16>, vector<8x32xbf16>, vector<8x32xf32> -> vector<8x32xf32>
    %c0_24 = arith.constant 0 : index
    %c0_25 = arith.constant 0 : index
    %c0_26 = arith.constant 0 : index
    %41 = vector.load %arg7[%c0_24, %c0_25, %c0_26] : memref<1x8x32xf32, #tpu.memory_space<vmem>>, vector<1x8x32xf32>
    %42 = vector.shape_cast %41 : vector<1x8x32xf32> to vector<8x32xf32>
    %43 = vector.shape_cast %40 : vector<8x32xf32> to vector<1x8x32xf32>
    tpu.vector_store %arg7[%c0_24, %c0_25, %c0_26], %43 {strides = array<i32>} : memref<1x8x32xf32, #tpu.memory_space<vmem>>, vector<1x8x32xf32>,
    return
  }
  func.func @transform_0(%arg0: i32, %arg1: i32) -> (i32, i32, i32) {
    %c0_i32 = arith.constant 0 : i32
    %c0_i32_0 = arith.constant 0 : i32
    return %arg0, %arg1, %c0_i32 : i32, i32, i32
  }
  func.func @transform_1(%arg0: i32, %arg1: i32) -> (i32, i32, i32) {
    %c0_i32 = arith.constant 0 : i32
    %c0_i32_0 = arith.constant 0 : i32
    %c0_i32_1 = arith.constant 0 : i32
    return %arg0, %c0_i32, %c0_i32_0 : i32, i32, i32
  }
  func.func @transform_2(%arg0: i32, %arg1: i32) -> (i32, i32, i32) {
    %c0_i32 = arith.constant 0 : i32
    %c0_i32_0 = arith.constant 0 : i32
    %c0_i32_1 = arith.constant 0 : i32
    return %arg0, %c0_i32, %c0_i32_0 : i32, i32, i32
  }
  func.func @transform_3(%arg0: i32, %arg1: i32) -> (i32, i32, i32) {
    %c0_i32 = arith.constant 0 : i32
    %c0_i32_0 = arith.constant 0 : i32
    %c0_i32_1 = arith.constant 0 : i32
    return %arg0, %c0_i32, %c0_i32_0 : i32, i32, i32
  }
  func.func @transform_4(%arg0: i32, %arg1: i32) -> (i32, i32, i32) {
    %c0_i32 = arith.constant 0 : i32
    %c0_i32_0 = arith.constant 0 : i32
    return %arg0, %c0_i32, %arg1 : i32, i32, i32
  }
  func.func @transform_5(%arg0: i32, %arg1: i32) -> (i32, i32, i32) {
    %c0_i32 = arith.constant 0 : i32
    %c0_i32_0 = arith.constant 0 : i32
    return %arg0, %arg1, %c0_i32 : i32, i32, i32
  }
  func.func @transform_6(%arg0: i32, %arg1: i32) -> (i32, i32, i32) {
    %c0_i32 = arith.constant 0 : i32
    %c0_i32_0 = arith.constant 0 : i32
    return %arg0, %arg1, %c0_i32 : i32, i32, i32
  }
}

</mosaic_0001>

<bundles_post_ra>
// kernel: tpu_custom_call.1
= control target key start
LH: loop header
LB: loop body
LE: loop exit
PB: predicated region body
PF: predicated region fallthrough
CT: control target
= control target key end

     0   :  { %s1425_s0 = inlined_call_operand.hbm [shape: f32[4,8,32], index: 0, kind: input, shape index: {}]   ;;  %s1426_s1 = inlined_call_operand.hbm [shape: f32[4,8,32], index: 1, kind: input, shape index: {}]   ;;  %s1427_s2 = inlined_call_operand.hbm [shape: f32[4,8,32], index: 2, kind: input, shape index: {}]   ;;  %s1428_s3 = inlined_call_operand.hbm [shape: f32[4,1,8], index: 3, kind: input, shape index: {}]   ;;  %s1429_s4 = inlined_call_operand.hbm [shape: f32[4,1,8], index: 4, kind: input, shape index: {}]   ;;  %s1430_s5 = inlined_call_operand.hbm [shape: f32[4,8,32], index: 5, kind: output, shape index: {0}]   ;;  %s1431_s6 = inlined_call_operand.hbm [shape: f32[4,8,8], index: 6, kind: output, shape index: {1}]  }
   0x1   :  { %1439 = sst [smem:[#allocation25_spill]] %s1425_s0 }
   0x2   :  { %1440 = sst [smem:[#allocation26_spill]] %s1426_s1 }
   0x3   :  { %1441 = sst [smem:[#allocation27_spill]] %s1428_s3 }
   0x4   :  { %1442 = sst [smem:[#allocation28_spill]] %s1430_s5 }
   0x5   :  { %12 = vsyncpa [#allocation3], 0 }
   0x6   :  { %14 = vsyncpa [#allocation3 + $0x1], 0 }
   0x7   :  { %15 = vsyncpa [#allocation6], 0 }
   0x8   :  { %17 = vsyncpa [#allocation6 + $0x1], 0 }
   0x9   :  { %18 = vsyncpa [#allocation9], 0 }
   0xa   :  { %20 = vsyncpa [#allocation9 + $0x1], 0 }
   0xb   :  { %21 = vsyncpa [#allocation4], 0 }
   0xc   :  { %23 = vsyncpa [#allocation4 + $0x1], 0 }
   0xd   :  { %24 = vsyncpa [#allocation13], 0 }
   0xe   :  { %26 = vsyncpa [#allocation13 + $0x1], 0  ;;  %s1211_s21 = smov 0   ;;  %s1213_s22 = smov 0  }
   0xf   :  { %s1215_s23 = smov 0   ;;  %s1217_s24 = smov 0  }
  0x10   :  { %s1219_s25 = smov 0   ;;  %s1221_s26 = smov 0  }
  0x11 LB: > { %1443 = sst [smem:[#allocation19_spill]] %s1153_s21  ;;  %s1242_s27 = sadd.s32 4294967295, %s1173_s26   ;;  %s1173_s26 = sphi %s1221_s26, %s32_s26   ;;  %s1169_s25 = sphi %s1219_s25, %s1468_s25   ;;  %s1165_s24 = sphi %s1217_s24, %s1467_s24   ;;  %s1161_s23 = sphi %s1215_s23, %s1463_s23   ;;  %s1157_s22 = sphi %s1213_s22, %s1466_s22   ;;  %s1153_s21 = sphi %s1211_s21, %s1465_s21  }
  0x12   : > { %1444 = sst [smem:[#allocation20_spill]] %s1161_s23  ;;  %s784_s28 = sadd.s32 4294967294, %s1173_s26  }
  0x13   : > { %1445 = sst [smem:[#allocation21_spill]] %s1173_s26  ;;  %s44_s29 = sadd.s32 1, %s1169_s25 }
  0x14   : > { %s53_s30 = sadd.s32 1, %s1161_s23  ;;  %p46_p0 = scmp.ge.s32.totalorder %s44_s29, 4 }
  0x15   : > { %p60_p1 = scmp.ne.s32.totalorder %s1161_s23, %s1157_s22  ;;  %p61_p2 = scmp.eq.s32.totalorder %s1173_s26, 0 }
  0x16   : > { %p66_p3 = scmp.ne.s32.totalorder %s1157_s22, %s1153_s21  ;;  %s1470_s29 = smov (%p46_p0, %s44_s29), 0 }
  0x17   : > { %1446 = sst [smem:[#allocation22_spill]] %s1470_s29  ;;  %p1254_p4 = por %p61_p2, %p60_p1 }
  0x18   : > { %p67_p5 = scmp.eq.s32.totalorder %s1242_s27, 0  ;;  %s48_s8 = ssub.s32 %s1169_s25, %s1470_s29 }
  0x19   : > { %p198_p6 = scmp.eq.s32.totalorder %s1242_s27, 3  ;;  %p51_p7 = scmp.eq.s32.totalorder %s48_s8, 0 }
  0x1a   : > { %p1262_p8 = por %p67_p5, %p66_p3  ;;  %p204_p10 = scmp.eq.s32.totalorder %s784_s28, 3 }
  0x1b   : > { %p1266_p9 = por %p198_p6, %p60_p1  ;;  %p844_p12 = scmp.lt.s32.totalorder %s1173_s26, 4 }
  0x1c   : > { %s1271_s11 = scalar_select %p51_p7, %s1161_s23, %s53_s30  }
  0x1d   : > { %p1273_p11 = por %p204_p10, %p66_p3  ;;  %s1279_s13 = sand.u32 1, %s1161_s23  }
  0x1e   : > { %1450 = sst [smem:[#allocation23_spill]] %s1271_s11  ;;  %s1282_s14 = sshll.u32 %s1279_s13, 3 }
  0x1f   : > { %s1451_s12 = scalar_select %p1273_p11, 1, 0 }
  0x20   : > { %s1285_s15 = sshll.u32 %s1169_s25, 3  ;;  %p1289_p13 = pnand %p844_p12, %p1254_p4 }
  0x21   : > { %1452 = sst [smem:[#allocation24_spill]] %s1451_s12  ;;  %s272_s17 = sand.u32 1, %s1173_s26  }
  0x22   : > { %s1454_s1 = sld [smem:[#allocation26_spill]]  ;;  %s276_s30 = scalar_lea.vmem [#allocation5], %s1282_s14 }
  0x23   : > { %s284_s8 = sshll.u32 %s276_s30, 4  ;;  %s273_s7 = scalar_lea.sflag [#allocation6], %s272_s17  ;;  %s285_s8 = int_to_ptr.vmem [resolvable:$true] %s284_s8 }
  0x24   : > { %p793_p0 = scmp.ge.s32.totalorder %s1173_s26, 1  ;;  %p343_p1 = scmp.lt.s32.totalorder %s1173_s26, 5 }
  0x25   : > { %s1456_s3 = sld [smem:[#allocation27_spill]]  ;;  %s256_s18 = scalar_lea.vmem [#allocation2], %s1282_s14 }
  0x26   : > { %p1303_p2 = pnand %p793_p0, %p343_p1  ;;  %s1457_s0 = sld [smem:[#allocation25_spill]] }
  0x27   : > { %s265_s19 = sshll.u32 %s256_s18, 4  ;;  %s299_s21 = scalar_lea.hbm %s1427_s2, %s1285_s15  ;;  %s266_s19 = int_to_ptr.vmem [resolvable:$true] %s265_s19 }
  0x28   : > { %s280_s20 = scalar_lea.hbm %s1454_s1, %s1285_s15  ;;  %s313_s1 = scalar_lea.vmem [#allocation8], %s1279_s13 }
  0x29   : > { %s282_s28 = sshll.u32 %s280_s20, 4  ;;  %s320_s11 = sshll.u32 %s313_s1, 4  ;;  %s283_s28 = int_to_ptr.hbm [resolvable:$true] %s282_s28  ;;  %s321_s11 = int_to_ptr.vmem [resolvable:$true] %s320_s11 }
  0x2a   : > { %827 = dma.hbm_to_vmem [thread:$0]  (!%p1289_p13), %s283_s28, 128, %s285_s8, %s273_s7  }
  0x2b   : > { %s316_s20 = scalar_lea.hbm %s1456_s3, %s1169_s25  ;;  %s311_s28 = scalar_lea.sflag [#allocation9], %s272_s17 }
  0x2c   : > { %s318_s30 = sshll.u32 %s316_s20, 4  ;;  %s261_s12 = scalar_lea.hbm %s1457_s0, %s1285_s15  ;;  %s319_s30 = int_to_ptr.hbm [resolvable:$true] %s318_s30 }
  0x2d   : > { %833 = dma.hbm_to_vmem [thread:$0]  (!%p1289_p13), %s319_s30, 16, %s321_s11, %s311_s28  }
  0x2e   : > { %s263_s3 = sshll.u32 %s261_s12, 4  ;;  %s253_s20 = scalar_lea.sflag [#allocation3], %s1279_s13  ;;  %s264_s3 = int_to_ptr.hbm [resolvable:$true] %s263_s3 }
  0x2f   : > { %824 = dma.hbm_to_vmem [thread:$0]  (!%p1289_p13), %s264_s3, 128, %s266_s19, %s253_s20  }
  0x30   : > { %s295_s11 = scalar_lea.vmem [#allocation7], %s1282_s14  ;;  %s301_s26 = sshll.u32 %s299_s21, 4  ;;  %s302_s26 = int_to_ptr.hbm [resolvable:$true] %s301_s26 }
  0x31   : > { %s303_s30 = sshll.u32 %s295_s11, 4  ;;  %s334_s12 = scalar_lea.hbm %s1429_s4, %s1169_s25  ;;  %s304_s30 = int_to_ptr.vmem [resolvable:$true] %s303_s30 }
  0x32   : > { %830 = dma.hbm_to_vmem [thread:$0]  (!%p1289_p13), %s302_s26, 128, %s304_s30, %s273_s7  }
  0x33   : > { %s330_s18 = scalar_lea.vmem [#allocation10], %s1279_s13  ;;  %s336_s5 = sshll.u32 %s334_s12, 4  ;;  %s337_s5 = int_to_ptr.hbm [resolvable:$true] %s336_s5 }
  0x34   : > { %s338_s0 = sshll.u32 %s330_s18, 4  ;;  %347 = sbr.rel (%p1303_p2) target bundleno = 741 (0x2e5), region = 40  ;;  %s339_s0 = int_to_ptr.vmem [resolvable:$true] %s338_s0 }
  0x35   : > { %836 = dma.hbm_to_vmem [thread:$0]  (!%p1289_p13), %s337_s5, 16, %s339_s0, %s311_s28  }
  0x36   : > { %s1339_s3 = sand.u32 (!%p1303_p2), 1, %s1157_s22  }
  0x37   : > { %s1342_s21 = sshll.u32 (!%p1303_p2), %s1339_s3, 3  ;;  %s350_s26 = scalar_lea.sflag (!%p1303_p2), [#allocation3], %s1339_s3 }
  0x38   : > { %s353_s13 = scalar_lea.vmem (!%p1303_p2), [#allocation2], %s1342_s21 }
  0x39   : > { %1132 = dma.done.wait (%p1262_p8), %s350_s26, 128  }
  0x3a   : > { %1134 = vsyncadd (%p1262_p8), %s350_s26, 4294967168  ;;  %s359_s0 = sand.u32 1, %s1242_s27   ;;  %s363_s29 = scalar_lea.vmem [#allocation5], %s1342_s21 }
  0x3b   : > { %s360_s5 = scalar_lea.sflag [#allocation6], %s359_s0 }
  0x3c   : > { %1136 = dma.done.wait (%p1262_p8), %s360_s5, 256  }
  0x3d   : > { %1138 = vsyncadd (%p1262_p8), %s360_s5, 4294967040  ;;  %s373_s14 = scalar_lea.vmem [#allocation7], %s1342_s21  ;;  %s380_s15 = scalar_lea.sflag [#allocation9], %s359_s0 }
  0x3e   : > { %s382_s16 = scalar_lea.vmem [#allocation8], %s1339_s3 }
  0x3f   : > { %1140 = dma.done.wait (%p1262_p8), %s380_s15, 32  }
  0x40   : > { %1142 = vsyncadd (%p1262_p8), %s380_s15, 4294967264  ;;  %s391_s27 = scalar_lea.vmem [#allocation10], %s1339_s3  ;;  %v446_v1 = vld [vmem:[%s363_s29] sm:$0xff]  ;;  %vm453_vm0 = vcmask 261120   ;;  %v445_v2 = vld [vmem:[%s353_s13] sm:$0xff]  ;;  %v1175_v7 = vmov 0  }
  0x41   : > { %v449_v0 = vld [vmem:[%s391_s27] sm:$0x1]  ;;  %v452_v3 = vpack.c.bf16 %v446_v1, %v446_v1  ;;  %v450_v5 = vmul.f32 0.17677669, %v445_v2  ;;  %vm517_vm5 = vcmask 64512   ;;  %vm535_vm7 = vcmask 1043456  }
  0x42   : > { %473 = vxpose.xlu0.b32.start.end [1/1] (short) (narrow) %v449_v0, 8  ;;  %v448_v12 = vld [vmem:[%s382_s16] sm:$0x1]  ;;  %s443_s9 = scalar_lea.vmem [#allocation12], %s1342_s21  ;;  %s803_s7 = sshll.u32 %s1165_s24, 3 }
  0x43   : > { %v458_v4 = vsel %vm453_vm0, %v452_v3, 0  ;;  %v451_v6 = vpack.c.bf16 %v450_v5, %v450_v5  ;;  %vm506_vm2 = vcmp.gt.f32.partialorder %v448_v12, 0.0  ;;  %v447_v23 = vld [vmem:[%s373_s14] sm:$0xff]  ;;  %s585_s20 = scalar_lea.hbm %s1431_s6, %s803_s7  ;;  %s587_s1 = sshll.u32 %s443_s9, 4  ;;  %s588_s1 = int_to_ptr.vmem [resolvable:$true] %s587_s1 }
  0x44   : > { %467 = vmatpush.bf16.xpose.msra.mxu0 %v458_v4  ;;  %v512_v13 = vsel %vm506_vm2, 1, %v1175_v7  ;;  %v531_v24 = vpack.c.bf16 %v447_v23, %v447_v23  ;;  %s589_s17 = sshll.u32 %s585_s20, 4  ;;  %s559_s11 = scalar_lea.sflag [#allocation13], %s1339_s3  ;;  %s590_s17 = int_to_ptr.hbm [resolvable:$true] %s589_s17 }
  0x45   : > { %v513_v14 = vperm.slane %v512_v13, 0  ;;  %s1065_s30 = sshra.s32 %s590_s17, 4  ;;  %s1071_s24 = scalar_lea.hbm %s1431_s6, 32  ;;  %s1066_s30 = int_to_ptr.hbm [resolvable:$true] %s1065_s30 }
  0x46   : > { %v537_v25 = vsel %vm535_vm7, %v531_v24, 0  ;;  %s1067_s23 = scalar_lea.hbm %s1066_s30, 8  ;;  %p1072_p6 = scmp.lt.s32.totalorder %s1066_s30, %s1431_s6 }
  0x47   : > { %vm514_vm3 = vcmp.eq.s32.totalorder %v513_v14, 1  ;;  %546 = vmatpush.bf16.msra.mxu1 %v537_v25  ;;  %p1068_p3 = scmp.ne.s32.totalorder %s1066_s30, %s1067_s23  ;;  %p1073_p7 = scmp.lt.s32.totalorder %s1071_s24, %s1067_s23 }
  0x49   : > { %p1069_p4 = pnand %p1068_p3, %p1266_p9  ;;  %p1074_p8 = por %p1073_p7, %p1072_p6 }
  0x4b   : > { %799 = vmatmul.msk.bf16.vlgmr.msra.gmra.mxu0 %vm453_vm0, %v451_v6  ;;  %p1070_p5 = pneg %p1069_p4 }
  0x4d   : > { %p1075_p10 = pnand %p1074_p8, %p1070_p5 }
  0xa9   : > { %896 = vset.pattern.permute.xlu0 %v1175_v7 }
  0xc8   : > { %v469_v8 = vpop.f32.mrf.mxu0 }
  0xd0   : > { %v471_v9 = vpop.f32.mrf.mxu0 }
  0xe6   : > { %v489_v10 = vpop.trf.xlu0 }
  0xe7   : > { %vm505_vm1 = vcmp.gt.f32.partialorder %v489_v10, 0.0 }
  0xe8   : > { %v507_v11 = vsel %vm505_vm1, 1, %v1175_v7 }
  0xe9   : > { %509 = vperm.xlu0 %896, %v507_v11  }
 0x15b   : > { %v510_v15 = vpop.permute.xlu0 %509 }
 0x15c   : > { %vm511_vm4 = vcmp.eq.s32.totalorder %v510_v15, 1 }
 0x15d   : > { %vm515_vm6 = vmand %vm511_vm4, %vm514_vm3 }
 0x15e   : > { %v516_v16 = vsel %vm515_vm6, %v469_v8, 1e-09 }
 0x15f   : > { %v518_v17 = vsel %vm517_vm5, %v516_v16, -inf }
 0x160   : > { %519 = vmax.xlane.f32.xlu1 %v518_v17 }
 0x1d3   : > { %v520_v18 = vpop.xlane.xlu1 %519 }
 0x1d4   : > { %v521_v19 = vsub.f32 %v516_v16, %v520_v18 }
 0x1d6   : > { %v522_v20 = vmul.f32 1.442695, %v521_v19 }
 0x1d8   : > { %897 = vpow2.f32 %v522_v20 }
 0x1de   : > { %v898_v21 = vpop.eup %897 }
 0x1df   : > { %v524_v22 = vsel %vm517_vm5, %v898_v21, 0.0 }
 0x1e0   : > { %525 = vadd.xlane.f32.xlu1 %v524_v22 }
 0x253   : > { %v526_v26 = vpop.xlane.xlu1 %525 }
 0x254   : > { %899 = vrcp.f32 %v526_v26 }
 0x25a   : > { %v900_v27 = vpop.eup %899 }
 0x25b   : > { %v528_v28 = vmul.f32 %v900_v27, %v898_v21 }
 0x25d   : > { %v530_v29 = vpack.c.bf16 %v528_v28, %v528_v28  ;;  %529 = vst.msk [vmem:[%s443_s9] sm:$0xff] %vm517_vm5, %v528_v28 }
 0x25f   : > { %800 = vmatmul.msk.bf16.vlgmr.msra.gmra.mxu1 %vm517_vm5, %v530_v29 }
 0x260   : > { %1078 = shalt.err (!%p1075_p10)
}
 0x261   : > { %818 = dma.vmem_to_hbm [thread:$0]  (%p1266_p9), %s588_s1, 128, %s590_s17, %s559_s11  }
 0x262   : > { %s1458_s5 = sld [smem:[#allocation28_spill]]  ;;  %s436_s14 = scalar_lea.vmem [#allocation11], %s1342_s21 }
 0x263   : > { %s572_s15 = sshll.u32 %s436_s14, 4  ;;  %s554_s27 = scalar_lea.sflag [#allocation4], %s1339_s3  ;;  %s573_s15 = int_to_ptr.vmem [resolvable:$true] %s572_s15 }
 0x268   : > { %s570_s29 = scalar_lea.hbm %s1458_s5, %s803_s7  ;;  %s1099_s7 = scalar_lea.hbm %s1458_s5, 32 }
 0x269   : > { %s574_s16 = sshll.u32 %s570_s29, 4  ;;  %s575_s16 = int_to_ptr.hbm [resolvable:$true] %s574_s16 }
 0x26a   : > { %s1093_s9 = sshra.s32 %s575_s16, 4  ;;  %s1094_s9 = int_to_ptr.hbm [resolvable:$true] %s1093_s9 }
 0x26b   : > { %s1095_s28 = scalar_lea.hbm %s1094_s9, 8  ;;  %p1100_p1 = scmp.lt.s32.totalorder %s1094_s9, %s1458_s5 }
 0x26c   : > { %p1096_p12 = scmp.ne.s32.totalorder %s1094_s9, %s1095_s28  ;;  %p1101_p2 = scmp.lt.s32.totalorder %s1099_s7, %s1095_s28 }
 0x26e   : > { %p1097_p13 = pnand %p1096_p12, %p1266_p9  ;;  %p1102_p3 = por %p1101_p2, %p1100_p1 }
 0x270   : > { %p1098_p0 = pneg %p1097_p13 }
 0x272   : > { %p1103_p4 = pnand %p1102_p3, %p1098_p0 }
 0x2dc   : > { %v548_v30 = vpop.f32.mrf.mxu1 }
 0x2dd   : > { %552 = vst.msk [vmem:[%s436_s14] sm:$0xff] %vm453_vm0, %v548_v30 }
 0x2de   : > { %1106 = shalt.err (!%p1103_p4)
}
 0x2df   : > { %817 = dma.vmem_to_hbm [thread:$0]  (%p1266_p9), %s573_s15, 128, %s575_s16, %s554_s27  }
 0x2e4   : > { %v550_v31 = vpop.f32.mrf.mxu1 }
 0x2e5 PF: > { %s1459_s3 = sld [smem:[#allocation21_spill]] }
 0x2e6   : > { %s1460_s17 = sld [smem:[#allocation19_spill]] }
 0x2eb   : > { %p845_p5 = scmp.ge.s32.totalorder %s1459_s3, 2 }
 0x2ec   : > { %s601_s30 = sand.u32 1, %s1460_s17  }
 0x2ed   : > { %p838_p6 = pnand %p845_p5, %p1273_p11  ;;  %s602_s23 = scalar_lea.sflag [#allocation4], %s601_s30 }
 0x2ef   : > { %p839_p7 = pneg %p838_p6 }
 0x2f1   : > { %1144 = dma.done.wait (%p839_p7), %s602_s23, 128  }
 0x2f2   : > { %1146 = vsyncadd (%p839_p7), %s602_s23, 4294967168  ;;  %s612_s8 = scalar_lea.sflag [#allocation13], %s601_s30 }
 0x2f3   : > { %1148 = dma.done.wait (%p839_p7), %s612_s8, 128  }
 0x2f4   : > { %1150 = vsyncadd (%p839_p7), %s612_s8, 4294967168  ;;  %s32_s26 = sadd.s32 1, %s1459_s3   ;;  %s1462_s10 = sld [smem:[#allocation20_spill]] }
 0x2f5   : > { %p29_p8 = scmp.ge.s32.totalorder %s32_s26, 6   ;;  %s1463_s23 = sld [smem:[#allocation23_spill]] }
 0x2f6   : > { %s1464_s12 = sld [smem:[#allocation22_spill]]  ;;  %s1465_s21 = smov %s1157_s22 }
 0x2f7   : > { %s1467_s24 = smov %s1169_s25 }
 0x2f8   :  { %31 = sbr.rel (!%p29_p8) target bundleno = 17 (0x11), region = 150 }
 0x2fa   : > { %s1466_s22 = smov %s1462_s10 }
 0x2fc   : > { %s1468_s25 = smov %s1464_s12 }
 0x2fd   :  { %618 = vsyncpa [#allocation3], 1 }
 0x2fe   :  { %620 = vsyncpa [#allocation3 + $0x1], 1 }
 0x2ff   :  { %621 = vsyncpa [#allocation6], 1 }
 0x300   :  { %623 = vsyncpa [#allocation6 + $0x1], 1 }
 0x301   :  { %624 = vsyncpa [#allocation9], 1 }
 0x302   :  { %626 = vsyncpa [#allocation9 + $0x1], 1 }
 0x303   :  { %627 = vsyncpa [#allocation4], 1 }
 0x304   :  { %629 = vsyncpa [#allocation4 + $0x1], 1 }
 0x305   :  { %630 = vsyncpa [#allocation13], 1 }
 0x306   :  { %632 = vsyncpa [#allocation13 + $0x1], 1 }

</bundles_post_ra>
